<compile_context>
chip_gen: v7x
topology: tpu7x:2x2x1
jax: 0.10.0
libtpu: 0.0.40
codegen_flags: <defaults>
</compile_context>

<pallas_src>
import jax
import jax.numpy as jnp
from jax.experimental import pallas as pl
from jax.experimental.pallas import tpu as pltpu


def _round_up(x: int, m: int) -> int:
    return ((x + m - 1) // m) * m


def _cdiv(a: int, b: int) -> int:
    return (a + b - 1) // b


# ----------------------------------------------------------------------------
# One-time parameter fusion (BN folding + output-lane packing + bf16 cast).
# ----------------------------------------------------------------------------
def fuse_mlp2hl_params(p, eps=1e-5, mxu_dtype=jnp.bfloat16):
    """Fold bn2 -> (w1,b1), bn1 -> (w2,b2); pad w2/b2/w3/b3 so middle_feat and
    out share one lane-dense output buffer of width OUT_W = round_up(h2+n_t,128):
    columns [0:h2] = middle_feat, [h2:h2+n_t] = out, rest exactly zero.
    MXU weight matrices are stored in `mxu_dtype` (bf16); biases stay f32."""
    h1 = p["w1"].shape[1]
    h2 = p["w2"].shape[1]
    n_t = p["w3"].shape[1]
    out_w = _round_up(h2 + n_t, 128)

    # bn2 folds into Linear1 (bn2 is applied directly before it).
    s2 = p["bn2_gamma"] / jnp.sqrt(p["bn2_var"] + eps)
    w1f = p["w1"] * s2[:, None]                                      # (dim_in, h1)
    b1f = (p["bn2_beta"] - p["bn2_mean"] * s2) @ p["w1"] + p["b1"]   # (h1,)

    # bn1 sits between ReLU and Linear2 -> folds into Linear2.
    s1 = p["bn1_gamma"] / jnp.sqrt(p["bn1_var"] + eps)
    w2f = p["w2"] * s1[:, None]                                      # (h1, h2)
    b2f = (p["bn1_beta"] - p["bn1_mean"] * s1) @ p["w2"] + p["b2"]   # (h2,)

    # Pad Linear2 / Linear3 into the merged lane-dense output layout.
    w2p = jnp.zeros((h1, out_w), jnp.float32).at[:, :h2].set(w2f)
    b2p = jnp.zeros((out_w,), jnp.float32).at[:h2].set(b2f)
    w3p = jnp.zeros((out_w, out_w), jnp.float32).at[:h2, h2:h2 + n_t].set(p["w3"])
    b3p = jnp.zeros((out_w,), jnp.float32).at[h2:h2 + n_t].set(p["b3"])

    return {
        "w1": w1f.astype(mxu_dtype),                       # (dim_in, h1)   bf16
        "b1": b1f.reshape(1, -1).astype(jnp.float32),      # (1, h1)        f32
        "w2p": w2p.astype(mxu_dtype),                      # (h1, OUT_W)    bf16
        "b23p": jnp.stack([b2p, b3p]).astype(jnp.float32), # (2, OUT_W) row0=b2 row1=b3
        "w3p": w3p.astype(mxu_dtype),                      # (OUT_W, OUT_W) bf16
        "h2": h2, "n_t": n_t, "out_w": out_w,
    }


# ----------------------------------------------------------------------------
# Kernel: one batch tile -> one lane-dense (TM, OUT_W) output tile.
# ----------------------------------------------------------------------------
def _mlp2hl_kernel(x_ref, lf_ref, w1_ref, b1_ref, w2_ref, b23_ref, w3_ref, out_ref):
    mxu_dt = w1_ref.dtype

    # Layer 1: in-kernel lane concat of x || lower_f, single fused matmul.
    xin = jnp.concatenate([x_ref[...], lf_ref[...]], axis=-1).astype(mxu_dt)
    h = jnp.dot(xin, w1_ref[...], preferred_element_type=jnp.float32) + b1_ref[...]
    h = jnp.maximum(h, 0.0)

    # midp[:, :h2] = middle_feat, remaining columns are exactly zero.
    midp = (jnp.dot(h.astype(mxu_dt), w2_ref[...],
                    preferred_element_type=jnp.float32)
            + b23_ref[0:1, :])

    # comb[:, :h2] = middle_feat, comb[:, h2:h2+n_t] = out, rest zero.
    comb = (midp
            + jnp.dot(jnp.maximum(midp, 0.0).astype(mxu_dt), w3_ref[...],
                      preferred_element_type=jnp.float32)
            + b23_ref[1:2, :])

    out_ref[...] = comb.astype(out_ref.dtype)   # single unmasked lane-dense store


# ----------------------------------------------------------------------------
# Wrapper: batch-gridded pallas_call returning the packed (B, OUT_W) buffer.
# ----------------------------------------------------------------------------
def mlp_2hl_forward_packed(x, lower_f, fused, *, block_b=2048,
                           out_dtype=jnp.float32):
    """x: (B, feat_d), lower_f: (B, h_lower), fused: fuse_mlp2hl_params(...).
    Returns packed comb of shape (round_up(B,8), OUT_W):
      comb[:, :h2] = middle_feat, comb[:, h2:h2+n_t] = out.
    Prefer consuming this packed form and slicing lazily in the consumer."""
    B, feat_d = x.shape
    h_low = lower_f.shape[1]
    dim_in = feat_d + h_low
    h1 = fused["w1"].shape[1]
    h2, n_t, out_w = fused["h2"], fused["n_t"], fused["out_w"]

    # Pad batch only to a multiple of 8 (<= 7 rows), NOT to a tile multiple;
    # ragged last grid blocks are handled by Pallas edge-block masking.
    bp = _round_up(B, 8)
    if bp != B:
        x = jnp.pad(x, ((0, bp - B), (0, 0)))
        lower_f = jnp.pad(lower_f, ((0, bp - B), (0, 0)))

    # Big, 8-aligned batch tile; ~0.7 KB/row so TM=2048 double-buffered is
    # ~3 MiB — well under the 32 MiB default scoped VMEM even on v7x.
    tm = min(_round_up(block_b, 8), bp)
    # Ensure >= 2 grid steps when the batch allows it so the "parallel" batch
    # axis can shard across v7x's two TensorCores.
    if bp >= 16 and _cdiv(bp, tm) < 2:
        tm = _round_up(_cdiv(bp, 2), 8)
    grid = (_cdiv(bp, tm),)

    row_spec = lambda cols: pl.BlockSpec((tm, cols), lambda i: (i, 0))
    fixed = lambda shape: pl.BlockSpec(shape, lambda i: (0, 0))   # VMEM-resident

    # Useful FLOPs only (not the zero-padded out_w contractions).
    flops = 2 * B * (dim_in * h1 + h1 * h2 + h2 * n_t)
    bytes_accessed = (4 * bp * dim_in                                 # f32 activations
                      + 2 * (dim_in * h1 + h1 * out_w + out_w * out_w)  # bf16 weights
                      + 4 * (h1 + 2 * out_w)                          # f32 biases
                      + jnp.dtype(out_dtype).itemsize * bp * out_w)   # packed output

    comb = pl.pallas_call(
        _mlp2hl_kernel,
        out_shape=jax.ShapeDtypeStruct((bp, out_w), out_dtype),
        grid=grid,
        in_specs=[
            row_spec(feat_d),                 # x
            row_spec(h_low),                  # lower_f
            fixed((dim_in, h1)),              # w1 (fused, bf16)
            fixed((1, h1)),                   # b1 (f32)
            fixed((h1, out_w)),               # w2 (padded, bf16)
            fixed((2, out_w)),                # [b2; b3] slab (f32)
            fixed((out_w, out_w)),            # w3 (padded, bf16)
        ],
        out_specs=pl.BlockSpec((tm, out_w), lambda i: (i, 0)),
        compiler_params=pltpu.CompilerParams(
            dimension_semantics=("parallel",)),
        cost_estimate=pl.CostEstimate(
            flops=flops, transcendentals=0, bytes_accessed=bytes_accessed),
    )(x, lower_f, fused["w1"], fused["b1"], fused["w2p"], fused["b23p"],
      fused["w3p"])
    return comb


def mlp_2hl_forward(x, lower_f, fused, **kw):
    """Convenience unpacking wrapper -> (middle_feat, out).  For maximum
    efficiency consume mlp_2hl_forward_packed directly (slicing here costs an
    extra pass over the output unless XLA fuses it with the consumer)."""
    comb = mlp_2hl_forward_packed(x, lower_f, fused, **kw)
    B = x.shape[0]
    h2, n_t = fused["h2"], fused["n_t"]
    return comb[:B, :h2], comb[:B, h2:h2 + n_t]


# ----------------------------------------------------------------------------
# Pure-JAX reference (unfused f32, matches PyTorch eval-mode forward).
# ----------------------------------------------------------------------------
def _reference(x, lower_f, p):
    eps = 1e-5
    if lower_f is not None:
        x = jnp.concatenate([x, lower_f], axis=1)
        x = (x - p["bn2_mean"]) / jnp.sqrt(p["bn2_var"] + eps) * p["bn2_gamma"] + p["bn2_beta"]
    h = x @ p["w1"] + p["b1"]
    h = jnp.maximum(h, 0.0)
    h = (h - p["bn1_mean"]) / jnp.sqrt(p["bn1_var"] + eps) * p["bn1_gamma"] + p["bn1_beta"]
    mid = h @ p["w2"] + p["b2"]
    out = jnp.maximum(mid, 0.0) @ p["w3"] + p["b3"]
    return mid, out


if __name__ == "__main__":
    # Small shapes consistent with the module: stage > 0 weak learner,
    # dim_in = feat_d + hidden_size, dim_hidden1 = dim_hidden2 = hidden_size.
    B = 13           # batch (deliberately not a multiple of 8: exercises pad)
    feat_d = 24      # raw feature dim
    hidden = 32      # hidden_size (dim_hidden1 == dim_hidden2)
    n_targets = 8    # len(targets)
    dim_in = feat_d + hidden

    key = jax.random.PRNGKey(0)
    ks = jax.random.split(key, 12)

    params = {
        # BatchNorm1d(dim_in)
        "bn2_gamma": jax.random.uniform(ks[0], (dim_in,), jnp.float32, 0.5, 1.5),
        "bn2_beta":  jax.random.normal(ks[1], (dim_in,), jnp.float32) * 0.1,
        "bn2_mean":  jax.random.normal(ks[2], (dim_in,), jnp.float32) * 0.1,
        "bn2_var":   jax.random.uniform(ks[3], (dim_in,), jnp.float32, 0.5, 1.5),
        # Linear(dim_in, hidden)  (stored as (in, out) = W.T of PyTorch layout)
        "w1": jax.random.normal(ks[4], (dim_in, hidden), jnp.float32) * 0.05,
        "b1": jax.random.normal(ks[5], (hidden,), jnp.float32) * 0.05,
        # BatchNorm1d(hidden)
        "bn1_gamma": jax.random.uniform(ks[6], (hidden,), jnp.float32, 0.5, 1.5),
        "bn1_beta":  jax.random.normal(ks[7], (hidden,), jnp.float32) * 0.1,
        "bn1_mean":  jax.random.normal(ks[8], (hidden,), jnp.float32) * 0.1,
        "bn1_var":   jax.random.uniform(ks[9], (hidden,), jnp.float32, 0.5, 1.5),
        # Linear(hidden, hidden)
        "w2": jax.random.normal(ks[10], (hidden, hidden), jnp.float32) * 0.05,
        "b2": jnp.linspace(-0.1, 0.1, hidden, dtype=jnp.float32),
        # Linear(hidden, n_targets)
        "w3": jax.random.normal(ks[11], (hidden, n_targets), jnp.float32) * 0.05,
        "b3": jnp.linspace(-0.05, 0.05, n_targets, dtype=jnp.float32),
    }

    kx, kl = jax.random.split(jax.random.PRNGKey(42))
    x = jax.random.normal(kx, (B, feat_d), jnp.float32)
    lower_f = jax.random.normal(kl, (B, hidden), jnp.float32)

    # Fuse once (re-run only if BN running stats change).
    fused = fuse_mlp2hl_params(params)

    mid, out = mlp_2hl_forward(x, lower_f, fused)
    jax.block_until_ready((mid, out))

    mid_ref, out_ref = _reference(x, lower_f, params)
    assert mid.shape == (B, hidden) and out.shape == (B, n_targets)
    # bf16 MXU operands (f32 accumulate): tolerance relaxed vs the f32 path.
    assert jnp.allclose(mid, mid_ref, atol=3e-2, rtol=3e-2)
    assert jnp.allclose(out, out_ref, atol=3e-2, rtol=3e-2)

    print("KERNEL_OK")
</pallas_src>

<mosaic_0001>
module attributes {stable_mosaic.version = 11 : i64} {
  func.func @_mlp2hl_kernel(%arg0: i32, %arg1: memref<8x24xf32, #tpu.memory_space<vmem>>, %arg2: memref<8x32xf32, #tpu.memory_space<vmem>>, %arg3: memref<56x32xbf16, #tpu.memory_space<vmem>>, %arg4: memref<1x32xf32, #tpu.memory_space<vmem>>, %arg5: memref<32x128xbf16, #tpu.memory_space<vmem>>, %arg6: memref<2x128xf32, #tpu.memory_space<vmem>>, %arg7: memref<128x128xbf16, #tpu.memory_space<vmem>>, %arg8: memref<8x128xf32, #tpu.memory_space<vmem>>) attributes {dimension_semantics = [#tpu.dimension_semantics<parallel>], iteration_bounds = array<i64: 2>, scalar_prefetch = 0 : i64, scratch_operands = 0 : i64, tpu.core_type = #tpu.core_type<tc>, window_params = [{transform_indices = @transform_0, window_bounds = array<i64: 8, 24>}, {transform_indices = @transform_1, window_bounds = array<i64: 8, 32>}, {pipeline_mode = #tpu.pipeline_mode<synchronous>, transform_indices = @transform_2, window_bounds = array<i64: 56, 32>}, {pipeline_mode = #tpu.pipeline_mode<synchronous>, transform_indices = @transform_3, window_bounds = array<i64: 1, 32>}, {pipeline_mode = #tpu.pipeline_mode<synchronous>, transform_indices = @transform_4, window_bounds = array<i64: 32, 128>}, {pipeline_mode = #tpu.pipeline_mode<synchronous>, transform_indices = @transform_5, window_bounds = array<i64: 2, 128>}, {pipeline_mode = #tpu.pipeline_mode<synchronous>, transform_indices = @transform_6, window_bounds = array<i64: 128, 128>}, {transform_indices = @transform_7, window_bounds = array<i64: 8, 128>}]} {
    %c0 = arith.constant 0 : index
    %c0_0 = arith.constant 0 : index
    %0 = vector.load %arg1[%c0, %c0_0] : memref<8x24xf32, #tpu.memory_space<vmem>>, vector<8x24xf32>
    %c0_1 = arith.constant 0 : index
    %c0_2 = arith.constant 0 : index
    %1 = vector.load %arg2[%c0_1, %c0_2] : memref<8x32xf32, #tpu.memory_space<vmem>>, vector<8x32xf32>
    %2 = tpu.concatenate %0, %1 in 1 : vector<8x24xf32>, vector<8x32xf32> -> vector<8x56xf32>
    %3 = arith.truncf %2 : vector<8x56xf32> to vector<8x56xbf16>
    %c0_3 = arith.constant 0 : index
    %c0_4 = arith.constant 0 : index
    %4 = vector.load %arg3[%c0_3, %c0_4] : memref<56x32xbf16, #tpu.memory_space<vmem>>, vector<56x32xbf16>
    %cst = arith.constant dense<0.000000e+00> : vector<8x32xf32>
    %5 = tpu.matmul %3, %4, %cst {dimension_numbers = #tpu.dot_dimension_numbers<[1], [0], [0], [1], [0, 0, 1, 1], [], []>} : vector<8x56xbf16>, vector<56x32xbf16>, vector<8x32xf32> -> vector<8x32xf32>
    %c0_5 = arith.constant 0 : index
    %c0_6 = arith.constant 0 : index
    %6 = vector.load %arg4[%c0_5, %c0_6] : memref<1x32xf32, #tpu.memory_space<vmem>>, vector<1x32xf32>
    %7 = vector.broadcast %6 : vector<1x32xf32> to vector<8x32xf32>
    %8 = arith.addf %5, %7 : vector<8x32xf32>
    %cst_7 = arith.constant 0.000000e+00 : f32
    %9 = vector.broadcast %cst_7 : f32 to vector<8x32xf32>
    %10 = arith.maximumf %8, %9 : vector<8x32xf32>
    %11 = arith.truncf %10 : vector<8x32xf32> to vector<8x32xbf16>
    %c0_8 = arith.constant 0 : index
    %c0_9 = arith.constant 0 : index
    %12 = vector.load %arg5[%c0_8, %c0_9] : memref<32x128xbf16, #tpu.memory_space<vmem>>, vector<32x128xbf16>
    %cst_10 = arith.constant dense<0.000000e+00> : vector<8x128xf32>
    %13 = tpu.matmul %11, %12, %cst_10 {dimension_numbers = #tpu.dot_dimension_numbers<[1], [0], [0], [1], [0, 0, 1, 1], [], []>} : vector<8x32xbf16>, vector<32x128xbf16>, vector<8x128xf32> -> vector<8x128xf32>
    %c0_11 = arith.constant 0 : index
    %c0_12 = arith.constant 0 : index
    %14 = vector.load %arg6[%c0_11, %c0_12] : memref<2x128xf32, #tpu.memory_space<vmem>>, vector<1x128xf32>
    %15 = vector.broadcast %14 : vector<1x128xf32> to vector<8x128xf32>
    %16 = arith.addf %13, %15 : vector<8x128xf32>
    %cst_13 = arith.constant 0.000000e+00 : f32
    %17 = vector.broadcast %cst_13 : f32 to vector<8x128xf32>
    %18 = arith.maximumf %16, %17 : vector<8x128xf32>
    %19 = arith.truncf %18 : vector<8x128xf32> to vector<8x128xbf16>
    %c0_14 = arith.constant 0 : index
    %c0_15 = arith.constant 0 : index
    %20 = vector.load %arg7[%c0_14, %c0_15] : memref<128x128xbf16, #tpu.memory_space<vmem>>, vector<128x128xbf16>
    %cst_16 = arith.constant dense<0.000000e+00> : vector<8x128xf32>
    %21 = tpu.matmul %19, %20, %cst_16 {dimension_numbers = #tpu.dot_dimension_numbers<[1], [0], [0], [1], [0, 0, 1, 1], [], []>} : vector<8x128xbf16>, vector<128x128xbf16>, vector<8x128xf32> -> vector<8x128xf32>
    %22 = arith.addf %16, %21 : vector<8x128xf32>
    %c1 = arith.constant 1 : index
    %c0_17 = arith.constant 0 : index
    %23 = vector.load %arg6[%c1, %c0_17] : memref<2x128xf32, #tpu.memory_space<vmem>>, vector<1x128xf32>
    %24 = vector.broadcast %23 : vector<1x128xf32> to vector<8x128xf32>
    %25 = arith.addf %22, %24 : vector<8x128xf32>
    %c0_18 = arith.constant 0 : index
    %c0_19 = arith.constant 0 : index
    %26 = vector.load %arg8[%c0_18, %c0_19] : memref<8x128xf32, #tpu.memory_space<vmem>>, vector<8x128xf32>
    tpu.vector_store %arg8[%c0_18, %c0_19], %25 {strides = array<i32>} : memref<8x128xf32, #tpu.memory_space<vmem>>, vector<8x128xf32>,
    return
  }
  func.func @transform_0(%arg0: i32) -> (i32, i32) {
    %c0_i32 = arith.constant 0 : i32
    %c0_i32_0 = arith.constant 0 : i32
    return %arg0, %c0_i32 : i32, i32
  }
  func.func @transform_1(%arg0: i32) -> (i32, i32) {
    %c0_i32 = arith.constant 0 : i32
    %c0_i32_0 = arith.constant 0 : i32
    return %arg0, %c0_i32 : i32, i32
  }
  func.func @transform_2(%arg0: i32) -> (i32, i32) {
    %c0_i32 = arith.constant 0 : i32
    %c0_i32_0 = arith.constant 0 : i32
    %c0_i32_1 = arith.constant 0 : i32
    return %c0_i32, %c0_i32_0 : i32, i32
  }
  func.func @transform_3(%arg0: i32) -> (i32, i32) {
    %c0_i32 = arith.constant 0 : i32
    %c0_i32_0 = arith.constant 0 : i32
    %c0_i32_1 = arith.constant 0 : i32
    return %c0_i32, %c0_i32_0 : i32, i32
  }
  func.func @transform_4(%arg0: i32) -> (i32, i32) {
    %c0_i32 = arith.constant 0 : i32
    %c0_i32_0 = arith.constant 0 : i32
    %c0_i32_1 = arith.constant 0 : i32
    return %c0_i32, %c0_i32_0 : i32, i32
  }
  func.func @transform_5(%arg0: i32) -> (i32, i32) {
    %c0_i32 = arith.constant 0 : i32
    %c0_i32_0 = arith.constant 0 : i32
    %c0_i32_1 = arith.constant 0 : i32
    return %c0_i32, %c0_i32_0 : i32, i32
  }
  func.func @transform_6(%arg0: i32) -> (i32, i32) {
    %c0_i32 = arith.constant 0 : i32
    %c0_i32_0 = arith.constant 0 : i32
    %c0_i32_1 = arith.constant 0 : i32
    return %c0_i32, %c0_i32_0 : i32, i32
  }
  func.func @transform_7(%arg0: i32) -> (i32, i32) {
    %c0_i32 = arith.constant 0 : i32
    %c0_i32_0 = arith.constant 0 : i32
    return %arg0, %c0_i32 : i32, i32
  }
}

</mosaic_0001>

<bundles_post_ra>
// kernel: tpu_custom_call.1
= control target key start
LH: loop header
LB: loop body
LE: loop exit
PB: predicated region body
PF: predicated region fallthrough
CT: control target
= control target key end

     0   :  { %s1521_s0 = inlined_call_operand.hbm [shape: f32[16,24], index: 0, kind: input, shape index: {}]   ;;  %s1522_s1 = inlined_call_operand.hbm [shape: f32[16,32], index: 1, kind: input, shape index: {}]   ;;  %s1523_s2 = inlined_call_operand.vmem [shape: bf16[56,32], index: 2, kind: input, shape index: {}]   ;;  %s1524_s3 = inlined_call_operand.hbm [shape: f32[1,32], index: 3, kind: input, shape index: {}]   ;;  %s1525_s4 = inlined_call_operand.hbm [shape: bf16[32,128], index: 4, kind: input, shape index: {}]   ;;  %s1526_s5 = inlined_call_operand.vmem [shape: f32[2,128], index: 5, kind: input, shape index: {}]   ;;  %s1527_s6 = inlined_call_operand.vmem [shape: bf16[128,128], index: 6, kind: input, shape index: {}]   ;;  %s1528_s7 = inlined_call_operand.hbm [shape: f32[16,128], index: 7, kind: output, shape index: {}]  }
   0x1   :  { %1534 = sst [smem:[#allocation18_spill]] %s1524_s3 }
   0x2   :  { %1535 = sst [smem:[#allocation19_spill]] %s1525_s4 }
   0x3   :  { %12 = vsyncpa [#allocation3], 0 }
   0x4   :  { %14 = vsyncpa [#allocation3 + $0x1], 0 }
   0x5   :  { %15 = vsyncpa [#allocation6], 0 }
   0x6   :  { %17 = vsyncpa [#allocation6 + $0x1], 0 }
   0x7   :  { %18 = vsyncpa [#allocation9], 0 }
   0x8   :  { %19 = vsyncpa [#allocation4], 0 }
   0x9   :  { %21 = vsyncpa [#allocation4 + $0x1], 0  ;;  %s1190_s24 = smov 0   ;;  %s1192_s25 = smov 0  }
   0xa   :  { %s1194_s26 = smov 0   ;;  %s1196_s27 = smov 0  }
   0xb LB: > { %1536 = sst [smem:[#allocation16_spill]] %s1134_s26  ;;  %s1211_s28 = sadd.s32 4294967295, %s1138_s27   ;;  %s1138_s27 = sphi %s1196_s27, %s1560_s27   ;;  %s1134_s26 = sphi %s1194_s26, %s1557_s26   ;;  %s1130_s25 = sphi %s1192_s25, %s1559_s25   ;;  %s1126_s24 = sphi %s1190_s24, %s1558_s24  }
   0xc   : > { %s758_s29 = sadd.s32 4294967294, %s1138_s27   ;;  %p47_p0 = scmp.ne.s32.totalorder %s1130_s25, %s1126_s24 }
   0xd   : > { %p1529_p1 = scmp.eq.s32.totalorder %s1211_s28, 0  ;;  %p208_p3 = scmp.eq.s32.totalorder %s758_s29, 1 }
   0xe   : > { %p759_p5 = scmp.ge.s32.totalorder %s1138_s27, 1  ;;  %p215_p7 = scmp.lt.s32.totalorder %s1138_s27, 3 }
   0xf   : > { %p1220_p4 = por %p1529_p1, %p47_p0  ;;  %p1225_p6 = por %p208_p3, %p47_p0 }
  0x10   : > { %p1230_p8 = pnand %p759_p5, %p215_p7  ;;  %s1140_s10 = smov [#allocation7]  }
  0x11   : > { %s1537_s30 = scalar_select %p1220_p4, 1, 0 }
  0x12   : > { %s1538_s8 = scalar_select %p1225_p6, 1, 0 }
  0x13   : > { %s1539_s9 = scalar_select %p1230_p8, 1, 0 }
  0x14   : > { %s231_s11 = sshll.u32 %s1140_s10, 4  ;;  %p867_p10 = pneg %p1230_p8  ;;  %s232_s11 = int_to_ptr.vmem [resolvable:$true] %s231_s11 }
  0x15   : > { %s1141_s12 = smov [#allocation8]   ;;  %s1541_s3 = sld [smem:[#allocation18_spill]] }
  0x16   : > { %s241_s13 = sshll.u32 %s1141_s12, 4  ;;  %p1239_p11 = pnand %p867_p10, %p1529_p1  ;;  %s1243_s13 = int_to_ptr.vmem [resolvable:$true] %s241_s13 }
  0x18   : > { %p946_p13 = pneg %p1239_p11 }
  0x1b   : > { %s944_s17 = scalar_lea.hbm %s1541_s3, 16 }
  0x1c   : > { %p945_p12 = scmp.ne.s32.totalorder %s1541_s3, %s944_s17  ;;  %p951_p5 = scmp.lt.u32.totalorder %s944_s17, %s1541_s3 }
  0x1e   : > { %p947_p0 = pnand %p946_p13, %p945_p12 }
  0x20   : > { %p948_p3 = pneg %p947_p0 }
  0x22   : > { %p953_p7 = pnand %p951_p5, %p948_p3 }
  0x24   : > { %956 = shalt.err (!%p953_p7)
}
  0x25   : > { %s957_s22 = scalar_lea.vmem %s232_s11, 16  ;;  %s964_s23 = scalar_lea.vmem %s232_s11, 32 }
  0x26   : > { %p958_p10 = scmp.ne.s32.totalorder %s232_s11, %s957_s22  ;;  %p965_p2 = scmp.lt.s32.totalorder %s232_s11, %s232_s11 }
  0x27   : > { %p966_p6 = scmp.lt.s32.totalorder %s964_s23, %s957_s22 }
  0x28   : > { %p960_p9 = pnand %p958_p10, %p946_p13 }
  0x29   : > { %p967_p4 = por %p966_p6, %p965_p2 }
  0x2a   : > { %p961_p1 = pneg %p960_p9 }
  0x2c   : > { %p968_p8 = pnand %p967_p4, %p961_p1 }
  0x2e   : > { %971 = shalt.err (!%p968_p8)
}
  0x2f   : > { %870 = dma.hbm_to_vmem [thread:$0]  (!%p1239_p11), %s1541_s3, 16, %s232_s11, [#allocation6]  }
  0x30   : > { %s1542_s4 = sld [smem:[#allocation19_spill]] }
  0x36   : > { %s972_s16 = scalar_lea.hbm %s1542_s4, 256 }
  0x37   : > { %p973_p9 = scmp.ne.s32.totalorder %s1542_s4, %s972_s16  ;;  %p979_p4 = scmp.lt.u32.totalorder %s972_s16, %s1542_s4 }
  0x39   : > { %p975_p2 = pnand %p973_p9, %p946_p13 }
  0x3b   : > { %p976_p1 = pneg %p975_p2 }
  0x3d   : > { %p981_p6 = pnand %p979_p4, %p976_p1 }
  0x3f   : > { %984 = shalt.err (!%p981_p6)
}
  0x40   : > { %s985_s11 = scalar_lea.vmem %s1243_s13, 256  ;;  %p993_p3 = scmp.lt.s32.totalorder %s1243_s13, %s1243_s13 }
  0x41   : > { %p986_p8 = scmp.ne.s32.totalorder %s1243_s13, %s985_s11  ;;  %p994_p5 = scmp.lt.s32.totalorder %s985_s11, %s985_s11 }
  0x43   : > { %p988_p12 = pnand %p986_p8, %p946_p13  ;;  %p995_p7 = por %p994_p5, %p993_p3 }
  0x45   : > { %p989_p0 = pneg %p988_p12 }
  0x47   : > { %p996_p10 = pnand %p995_p7, %p989_p0 }
  0x49   : > { %999 = shalt.err (!%p996_p10)
}
  0x4a   : > { %s1142_s21 = smov 64   ;;  %s1143_s22 = smov 4  }
  0x4b   : > { %873 = dma.hbm_to_vmem [thread:$0]  (!%p1239_p11), %s1542_s4, 256, %s1243_s13, [#allocation9], %s1142_s21, %s1142_s21, %s1143_s22  }
  0x4c   : > { %s1293_s10 = sadd.s32 1, %s1138_s27   ;;  %s34_s12 = sadd.s32 1, %s1134_s26 }
  0x4d   : > { %s31_s15 = ssub.s32 %s1138_s27, %s1293_s10  ;;  %p41_p13 = scmp.ne.s32.totalorder %s1134_s26, %s1130_s25 }
  0x4e   : > { %p32_p9 = scmp.eq.s32.totalorder %s31_s15, 0  ;;  %p42_p2 = scmp.eq.s32.totalorder %s1138_s27, 0 }
  0x4f   : > { %p1543_p1 = scmp.eq.s32.totalorder %s1211_s28, 1  ;;  %p887_p6 = scmp.lt.s32.totalorder %s1138_s27, 2 }
  0x50   : > { %s1309_s14 = scalar_select %p32_p9, %s1134_s26, %s34_s12  }
  0x51   : > { %p1303_p4 = por %p1543_p1, %p41_p13  ;;  %p43_p8 = por %p42_p2, %p41_p13 }
  0x52   : > { %1545 = sst [smem:[#allocation17_spill]] %s1309_s14  ;;  %s261_s17 = sand.u32 1, %s1134_s26  }
  0x53   : > { %s1544_s16 = scalar_select %p1303_p4, 1, 0 }
  0x54   : > { %s1312_s13 = sshll.u32 %s261_s17, 3  ;;  %s764_s18 = sshll.u32 %s1138_s27, 7 }
  0x55   : > { %s1318_s11 = scalar_lea.hbm %s1521_s0, %s764_s18  ;;  %s265_s21 = scalar_lea.vmem [#allocation2], %s1312_s13 }
  0x56   : > { %s272_s22 = sshll.u32 %s265_s21, 4  ;;  %p1323_p11 = pnand %p887_p6, %p43_p8  ;;  %s1321_s22 = int_to_ptr.vmem [resolvable:$true] %s272_s22 }
  0x57   : > { %s1330_s15 = scalar_lea.hbm %s1522_s1, %s764_s18  ;;  %s279_s19 = sand.u32 1, %s1138_s27  }
  0x58   : > { %s262_s20 = scalar_lea.sflag [#allocation3], %s261_s17  ;;  %s1000_s3 = scalar_lea.hbm %s1318_s11, 128 }
  0x59   : > { %p1001_p12 = scmp.ne.s32.totalorder %s1318_s11, %s1000_s3  ;;  %p1002_p0 = pneg %p1323_p11 }
  0x5a   : > { %s1005_s14 = scalar_lea.hbm %s1521_s0, 256  ;;  %p1006_p7 = scmp.lt.u32.totalorder %s1318_s11, %s1521_s0 }
  0x5b   : > { %p1003_p3 = pnand %p1002_p0, %p1001_p12  ;;  %p1007_p10 = scmp.lt.u32.totalorder %s1005_s14, %s1000_s3 }
  0x5c   : > { %p1009_p9 = scmp.lt.u32.totalorder %s1000_s3, %s1318_s11 }
  0x5d   : > { %p1004_p5 = pneg %p1003_p3  ;;  %p1008_p13 = por %p1007_p10, %p1006_p7 }
  0x5f   : > { %p1010_p2 = por %p1009_p9, %p1008_p13 }
  0x61   : > { %p1011_p1 = pnand %p1010_p2, %p1004_p5 }
  0x63   : > { %1014 = shalt.err (!%p1011_p1)
}
  0x64   : > { %s1015_s17 = scalar_lea.vmem %s1321_s22, 128  ;;  %s1144_s4 = smov [#allocation2]  }
  0x65   : > { %p1016_p6 = scmp.ne.s32.totalorder %s1321_s22, %s1015_s17  ;;  %s1020_s18 = sshll.u32 %s1144_s4, 4  ;;  %s1021_s18 = int_to_ptr.vmem [resolvable:$false] %s1020_s18 }
  0x66   : > { %s1022_s26 = scalar_lea.vmem %s1021_s18, 256  ;;  %p1023_p3 = scmp.lt.s32.totalorder %s1321_s22, %s1021_s18 }
  0x67   : > { %p1018_p8 = pnand %p1016_p6, %p1002_p0  ;;  %p1024_p7 = scmp.lt.s32.totalorder %s1022_s26, %s1015_s17 }
  0x69   : > { %p1019_p12 = pneg %p1018_p8  ;;  %p1025_p10 = por %p1024_p7, %p1023_p3 }
  0x6b   : > { %p1026_p13 = pnand %p1025_p10, %p1019_p12 }
  0x6d   : > { %1029 = shalt.err (!%p1026_p13)
}
  0x6e   : > { %877 = dma.hbm_to_vmem [thread:$0]  (!%p1323_p11), %s1318_s11, 128, %s1321_s22, %s262_s20  }
  0x6f   : > { %s283_s3 = scalar_lea.vmem [#allocation5], %s1312_s13  ;;  %s280_s12 = scalar_lea.sflag [#allocation6], %s279_s19 }
  0x70   : > { %s290_s14 = sshll.u32 %s283_s3, 4  ;;  %s1030_s21 = scalar_lea.hbm %s1330_s15, 128  ;;  %s291_s14 = int_to_ptr.vmem [resolvable:$true] %s290_s14 }
  0x71   : > { %p1031_p5 = scmp.ne.s32.totalorder %s1330_s15, %s1030_s21  ;;  %s1035_s4 = scalar_lea.hbm %s1522_s1, 256 }
  0x72   : > { %p1036_p1 = scmp.lt.u32.totalorder %s1330_s15, %s1522_s1  ;;  %p1037_p6 = scmp.lt.u32.totalorder %s1035_s4, %s1030_s21 }
  0x73   : > { %p1033_p9 = pnand %p1031_p5, %p1002_p0  ;;  %p1039_p12 = scmp.lt.u32.totalorder %s1030_s21, %s1330_s15 }
  0x74   : > { %p1038_p8 = por %p1037_p6, %p1036_p1 }
  0x75   : > { %p1034_p2 = pneg %p1033_p9 }
  0x76   : > { %p1040_p3 = por %p1039_p12, %p1038_p8 }
  0x78   : > { %p1041_p7 = pnand %p1040_p3, %p1034_p2 }
  0x7a   : > { %1044 = shalt.err (!%p1041_p7)
}
  0x7b   : > { %s1045_s13 = scalar_lea.vmem %s291_s14, 128  ;;  %s1145_s11 = smov [#allocation5]  }
  0x7c   : > { %p1046_p10 = scmp.ne.s32.totalorder %s291_s14, %s1045_s13  ;;  %s1050_s22 = sshll.u32 %s1145_s11, 4  ;;  %s1051_s22 = int_to_ptr.vmem [resolvable:$false] %s1050_s22 }
  0x7d   : > { %s1052_s19 = scalar_lea.vmem %s1051_s22, 256  ;;  %p1053_p9 = scmp.lt.s32.totalorder %s291_s14, %s1051_s22 }
  0x7e   : > { %p1048_p13 = pnand %p1046_p10, %p1002_p0  ;;  %p1054_p4 = scmp.lt.s32.totalorder %s1052_s19, %s1045_s13 }
  0x80   : > { %p1049_p5 = pneg %p1048_p13  ;;  %p1055_p1 = por %p1054_p4, %p1053_p9 }
  0x82   : > { %p1056_p6 = pnand %p1055_p1, %p1049_p5 }
  0x84   : > { %1059 = shalt.err (!%p1056_p6)
}
  0x85   : > { %880 = dma.hbm_to_vmem [thread:$0]  (!%p1323_p11), %s1330_s15, 128, %s291_s14, %s280_s12  }
  0x86   : > { %p1547_p2 = scmp.ne.s32.totalorder %s1539_s9, 0 }
  0x87   : > { %s1383_s20 = sand.u32 (!%p1547_p2), 1, %s1130_s25   ;;  %p1548_p4 = scmp.ne.s32.totalorder (!%p1547_p2), %s1537_s30, 0 }
  0x88   : > { %299 = sbr.rel (%p1547_p2) target bundleno = 941 (0x3ad), region = 48  ;;  %s1386_s3 = sshll.u32 (!%p1547_p2), %s1383_s20, 3 }
  0x89   : > { %s302_s21 = scalar_lea.sflag (!%p1547_p2), [#allocation3], %s1383_s20  ;;  %s305_s29 = scalar_lea.vmem (!%p1547_p2), [#allocation2], %s1386_s3 }
  0x8f   : > { %1105 = dma.done.wait (%p1548_p4), %s302_s21, 128  }
  0x90   : > { %1107 = vsyncadd (%p1548_p4), %s302_s21, 4294967168  ;;  %s310_s9 = sand.u32 1, %s1211_s28   ;;  %s314_s15 = scalar_lea.vmem [#allocation5], %s1386_s3 }
  0x91   : > { %s311_s23 = scalar_lea.sflag [#allocation6], %s310_s9 }
  0x92   : > { %1109 = dma.done.wait (%p1548_p4), %s311_s23, 128  }
  0x93   : > { %1111 = vsyncadd (%p1548_p4), %s311_s23, 4294967168  ;;  %p1549_p11 = scmp.eq.s32.totalorder %s1211_s28, 0 }
  0x95   : > { %1113 = dma.done.wait (%p1549_p11), [#allocation6], 16   ;;  %p1550_p0 = pmov %p1549_p11 }
  0x97   : > { %1115 = vsyncadd (%p1550_p0), [#allocation6], 4294967280  ;;  %p1551_p8 = pmov %p1550_p0 }
  0x98   : > { %p1552_p12 = pmov %p1550_p0 }
  0x99   : > { %1117 = dma.done.wait (%p1551_p8), [#allocation9], 256  }
  0x9a   : > { %1119 = vsyncadd (%p1552_p12), [#allocation9], 4294967040  ;;  %v1146_v0 = vmov 0.0   ;;  %vm1147_vm0 = vmmov 0   ;;  %v360_v1 = vld [vmem:[%s314_s15] sm:$0xff]  ;;  %s1148_s30 = smov 24  }
  0x9b   : > { %813 = vmatprep.subr.bf16.mxu0 %v1146_v0  ;;  %833 = vmatprep.subr.bf16.mxu1 %v1146_v0  ;;  %v930_v2 = vld [vmem:[%s1523_s2] sm:$0xff]   ;;  %v931_v3 = vld [vmem:[%s1523_s2 + $0x8] sm:$0xff]   ;;  %v932_v4 = vld [vmem:[%s1523_s2 + $0x10] sm:$0xff]   ;;  %vm407_vm1 = vcmask 1043456   ;;  %vm365_vm2 = vcmask 195584   ;;  %vm403_vm3 = vcmask 457728  }
  0x9c   : > { %821 = vmatprep.mubr.msk.bf16.mxu0 %vm1147_vm0, %v1146_v0  ;;  %849 = vmatprep.mubr.msk.bf16.mxu1 %vm1147_vm0, %v1146_v0  ;;  %v933_v5 = vld [vmem:[%s1523_s2 + $0x18] ss:$0 sps:$4 sm:$0xff]   ;;  %v359_v7 = vld [vmem:[%s305_s29] sm:$0xff]  ;;  %v938_v15 = vld [vmem:[%s1527_s6 + $0x10] sm:$0xff]   ;;  %vm474_vm4 = vcmask 261120   ;;  %s793_s9 = sshll.u32 %s1211_s28, 7 }
  0x9d   : > { %362 = vrot.lane.b32.xlu0 %v360_v1, %s1148_s30  ;;  %814 = vmatpush3.bf16.msra.mxu0 %v930_v2  ;;  %v409_v6 = vsel %vm407_vm1, %v933_v5, 0  ;;  %v934_v10 = vld [vmem:[#allocation8] sm:$0xff]   ;;  %v935_v12 = vld [vmem:[#allocation8 + $0x8] sm:$0xff]   ;;  %v939_v16 = vld [vmem:[%s1527_s6 + $0x18] sm:$0xff]   ;;  %s357_s23 = scalar_lea.vmem [#allocation10], %s1386_s3  ;;  %s1477_s12 = scalar_lea.hbm %s1528_s7, %s793_s9 }
  0x9e   : > { %815 = vmatprep.subr.bf16.mxu0 %v1146_v0  ;;  %v936_v13 = vld [vmem:[%s1527_s6] sm:$0xff]   ;;  %v937_v14 = vld [vmem:[%s1527_s6 + $0x8] sm:$0xff]   ;;  %v942_v27 = vld [vmem:[%s1527_s6 + $0x30] sm:$0xff]   ;;  %s646_s15 = sshll.u32 %s357_s23, 4  ;;  %s633_s17 = scalar_lea.sflag [#allocation4], %s1383_s20  ;;  %s1479_s15 = int_to_ptr.vmem [resolvable:$true] %s646_s15 }
  0x9f   : > { %834 = vmatpush3.bf16.msra.mxu1 %v936_v13  ;;  %v940_v17 = vld [vmem:[%s1527_s6 + $0x20] sm:$0xff]   ;;  %v941_v18 = vld [vmem:[%s1527_s6 + $0x28] sm:$0xff]   ;;  %v943_v28 = vld [vmem:[%s1527_s6 + $0x38] sm:$0xff]   ;;  %s1060_s28 = scalar_lea.vmem %s1479_s15, 128  ;;  %p1553_p7 = scmp.ne.s32.totalorder %s1544_s16, 0 }
  0xa0   : > { %835 = vmatprep.subr.bf16.mxu1 %v1146_v0  ;;  %v773_v19 = vld [vmem:[#allocation7] ss:$0 sm:$0xff]  ;;  %v791_v38 = vld [vmem:[%s1526_s5 + $0x1] ss:$0 sm:$0xff]  ;;  %p1061_p3 = scmp.ne.s32.totalorder %s1479_s15, %s1060_s28  ;;  %s1149_s3 = smov [#allocation10]  }
  0xa1   : > { %816 = vmatpush3.bf16.msra.mxu0 %v931_v3  ;;  %v779_v29 = vld [vmem:[%s1526_s5] ss:$0 sm:$0xff]  ;;  %s1064_s4 = sshll.u32 %s1149_s3, 4  ;;  %s1065_s4 = int_to_ptr.vmem [resolvable:$false] %s1064_s4 }
  0xa2   : > { %817 = vmatprep.subr.bf16.mxu0 %v1146_v0  ;;  %p1062_p10 = pnand %p1061_p3, %p1553_p7  ;;  %s1066_s18 = scalar_lea.vmem %s1065_s4, 256 }
  0xa3   : > { %836 = vmatpush3.bf16.msra.mxu1 %v937_v14  ;;  %p1067_p5 = scmp.lt.s32.totalorder %s1479_s15, %s1065_s4  ;;  %p1068_p9 = scmp.lt.s32.totalorder %s1066_s18, %s1060_s28 }
  0xa4   : > { %837 = vmatprep.subr.bf16.mxu1 %v1146_v0  ;;  %p1063_p13 = pneg %p1062_p10 }
  0xa5   : > { %818 = vmatpush3.bf16.msra.mxu0 %v932_v4  ;;  %p1069_p1 = por %p1068_p9, %p1067_p5 }
  0xa6   : > { %819 = vmatprep.subr.bf16.mxu0 %v1146_v0 }
  0xa7   : > { %838 = vmatpush3.bf16.msra.mxu1 %v938_v15  ;;  %p1070_p6 = pnand %p1069_p1, %p1063_p13 }
  0xa8   : > { %839 = vmatprep.subr.bf16.mxu1 %v1146_v0 }
  0xa9   : > { %820 = vmatpush3.bf16.msra.mxu0 %v409_v6 }
  0xaa   : > { %825 = vmatprep.subr.bf16.mxu0 %v1146_v0 }
  0xab   : > { %840 = vmatpush3.bf16.msra.mxu1 %v939_v16 }
  0xac   : > { %841 = vmatprep.subr.bf16.mxu1 %v1146_v0 }
  0xaf   : > { %842 = vmatpush3.bf16.msra.mxu1 %v940_v17 }
  0xb0   : > { %843 = vmatprep.subr.bf16.mxu1 %v1146_v0 }
  0xb3   : > { %844 = vmatpush3.bf16.msra.mxu1 %v941_v18 }
  0xb4   : > { %845 = vmatprep.subr.bf16.mxu1 %v1146_v0 }
  0xb7   : > { %846 = vmatpush3.bf16.msra.mxu1 %v942_v27 }
  0xb8   : > { %847 = vmatprep.subr.bf16.mxu1 %v1146_v0 }
  0xbb   : > { %848 = vmatpush3.bf16.msra.mxu1 %v943_v28 }
 0x10f   : > { %v363_v8 = vpop.permute.xlu0 %362 }
 0x110   : > { %v366_v9 = vsel %vm365_vm2, %v359_v7, %v363_v8 }
 0x111   : > { %v367_v11 = vpack.c.bf16 %v366_v9, %v366_v9 }
 0x113   : > { %822 = vmatmul.mubr.msk.bf16.vlgmr.msra.gmra.mrb[0].mxu0 %vm403_vm3, %v367_v11 }
 0x114   : > { %826 = vmatpush3.bf16.msra.mxu0 %v934_v10  ;;  %829 = vmatprep.mubr.msk.bf16.mxu0 %vm1147_vm0, %v1146_v0 }
 0x115   : > { %827 = vmatprep.subr.bf16.mxu0 %v1146_v0 }
 0x118   : > { %828 = vmatpush3.bf16.msra.mxu0 %v935_v12 }
 0x1e6   : > { %v445_v20 = vpop.f32.mrb[0].mxu0 }
 0x1e7   : > { %v446_v21 = vadd.f32 %v773_v19, %v445_v20  ;;  %v823_v22 = vpop.f32.mrb[1].mxu0 }
 0x1e8   : > { %v448_v23 = vpop.f32.mrb[2].mxu0 }
 0x1e9   : > { %v451_v24 = vmax.f32 %v446_v21, 0.0  ;;  %v824_v25 = vpop.f32.mrb[3].mxu0 }
 0x1eb   : > { %v452_v26 = vpack.c.bf16 %v451_v24, %v451_v24 }
 0x1ed   : > { %830 = vmatmul.mubr.msk.bf16.vlgmr.msra.gmra.mrb[4].mxu0 %vm474_vm4, %v452_v26 }
 0x2c0   : > { %v512_v30 = vpop.f32.mrb[4].mxu0 }
 0x2c1   : > { %v513_v31 = vadd.f32 %v779_v29, %v512_v30  ;;  %v831_v32 = vpop.f32.mrb[5].mxu0 }
 0x2c2   : > { %v515_v33 = vpop.f32.mrb[6].mxu0 }
 0x2c3   : > { %v518_v34 = vmax.f32 %v513_v31, 0.0  ;;  %v832_v35 = vpop.f32.mrb[7].mxu0 }
 0x2c5   : > { %v519_v36 = vpack.c.bf16 %v518_v34, %v518_v34 }
 0x2c7   : > { %850 = vmatmul.mubr.bf16.vlgmr.msra.gmra.mrb[0].mxu1 %v519_v36 }
 0x39a   : > { %v618_v37 = vpop.f32.mrb[0].mxu1 }
 0x39b   : > { %v624_v39 = vadd.f32 %v618_v37, %v513_v31  ;;  %v851_v40 = vpop.f32.mrb[1].mxu1 }
 0x39c   : > { %v621_v41 = vpop.f32.mrb[2].mxu1 }
 0x39d   : > { %v630_v42 = vadd.f32 %v791_v38, %v624_v39  ;;  %v852_v43 = vpop.f32.mrb[3].mxu1 }
 0x39f   : > { %631 = vst [vmem:[%s357_s23] sm:$0xff] %v630_v42 }
 0x3a0   : > { %1073 = shalt.err (!%p1070_p6)
}
 0x3a1   : > { %s1074_s20 = scalar_lea.hbm %s1477_s12, 128  ;;  %s1078_s11 = scalar_lea.hbm %s1528_s7, 256 }
 0x3a2   : > { %p1075_p2 = scmp.ne.s32.totalorder %s1477_s12, %s1074_s20  ;;  %p1079_p0 = scmp.lt.u32.totalorder %s1477_s12, %s1528_s7 }
 0x3a3   : > { %p1080_p8 = scmp.lt.u32.totalorder %s1078_s11, %s1074_s20  ;;  %p1082_p3 = scmp.lt.u32.totalorder %s1074_s20, %s1477_s12 }
 0x3a4   : > { %p1076_p4 = pnand %p1075_p2, %p1553_p7 }
 0x3a5   : > { %p1081_p12 = por %p1080_p8, %p1079_p0 }
 0x3a6   : > { %p1077_p11 = pneg %p1076_p4 }
 0x3a7   : > { %p1083_p10 = por %p1082_p3, %p1081_p12 }
 0x3a9   : > { %p1084_p13 = pnand %p1083_p10, %p1077_p11 }
 0x3ab   : > { %1087 = shalt.err (!%p1084_p13)
}
 0x3ac   : > { %865 = dma.vmem_to_hbm [thread:$0]  (%p1553_p7), %s1479_s15, 128, %s1477_s12, %s633_s17  }
 0x3ad PF: > { %s658_s21 = sand.u32 1, %s1126_s24   ;;  %p1554_p5 = scmp.ne.s32.totalorder %s1538_s8, 0 }
 0x3ae   : > { %p1555_p9 = scmp.ge.s32.totalorder %s1138_s27, 2  ;;  %s659_s29 = scalar_lea.sflag [#allocation4], %s658_s21 }
 0x3b0   : > { %p882_p1 = pnand %p1555_p9, %p1554_p5 }
 0x3b2   : > { %1121 = dma.done.wait (!%p882_p1), %s659_s29, 128  }
 0x3b3   : > { %1123 = vsyncadd (!%p882_p1), %s659_s29, 4294967168  ;;  %s1556_s9 = sld [smem:[#allocation16_spill]]  ;;  %s1557_s26 = sld [smem:[#allocation17_spill]] }
 0x3b4   : > { %p24_p6 = scmp.ge.s32.totalorder %s1293_s10, 4   ;;  %s1558_s24 = smov %s1130_s25 }
 0x3b5   : > { %s1560_s27 = smov %s1293_s10 }
 0x3b6   :  { %26 = sbr.rel (!%p24_p6) target bundleno = 11 (0xb), region = 114 }
 0x3b9   : > { %s1559_s25 = smov %s1556_s9 }
 0x3bd   :  { %664 = vsyncpa [#allocation3], 1 }
 0x3be   :  { %666 = vsyncpa [#allocation3 + $0x1], 1 }
 0x3bf   :  { %667 = vsyncpa [#allocation6], 1 }
 0x3c0   :  { %669 = vsyncpa [#allocation6 + $0x1], 1 }
 0x3c1   :  { %670 = vsyncpa [#allocation9], 1 }
 0x3c2   :  { %671 = vsyncpa [#allocation4], 1 }
 0x3c3   :  { %673 = vsyncpa [#allocation4 + $0x1], 1 }

</bundles_post_ra>
